<compile_context>
chip_gen: v5e
topology: v5e:2x2
jax: 0.10.0
libtpu: 0.0.40
codegen_flags: <defaults>
</compile_context>

<pallas_src>
import functools

import jax
import jax.numpy as jnp
from jax import lax
from jax.experimental import pallas as pl
from jax.experimental.pallas import tpu as pltpu

_LANE = 128


def _extractor_kernel(x_ref, w_ref, b_ref, o_ref, acc_ref):
    # x_ref: (B, TK) bf16   w_ref: (TK, Dp) bf16   b_ref: (1, Dp) f32
    # o_ref: (B, Dp) f32    acc_ref: (B, Dp) f32 scratch
    k = pl.program_id(0)

    @pl.when(k == 0)
    def _():
        acc_ref[...] = jnp.zeros_like(acc_ref)

    acc_ref[...] += jnp.dot(
        x_ref[...], w_ref[...], preferred_element_type=jnp.float32
    )

    @pl.when(k == pl.num_programs(0) - 1)
    def _():
        e = acc_ref[...] + b_ref[...]
        # l2_norm(e, axis=1): e * rsqrt(sum(e^2)).  Padded columns are exactly
        # zero, so they do not perturb the norm.  No epsilon, matching the
        # reference torch l2_norm (x / torch.norm(x)).
        inv = lax.rsqrt(jnp.sum(e * e, axis=1, keepdims=True))
        o_ref[...] = e * inv


def prepare_extractor_params(w, b):
    """One-time weight prep: fold 1/255 into W, cast W to bf16, pad D -> 128.

    w: (K, D) f32, b: (D,) f32  ->  (K, Dp) bf16, (1, Dp) f32
    """
    K, D = w.shape
    Dp = max(_LANE, ((D + _LANE - 1) // _LANE) * _LANE)
    w_scaled = (w * (1.0 / 255.0)).astype(jnp.bfloat16)
    w_padded = jnp.zeros((K, Dp), jnp.bfloat16).at[:, :D].set(w_scaled)
    b_padded = jnp.zeros((1, Dp), jnp.float32).at[0, :D].set(b)
    return w_padded, b_padded


def _pick_tk(K):
    # Largest lane-aligned K tile (<= 2048) that divides K; else whole K.
    for tk in (2048, 1024, 512, 256, 128):
        if K % tk == 0:
            return tk
    return K


@functools.partial(jax.jit, static_argnums=(3,))
def extractor_forward(x_nchw, w_prepped, b_prepped, d_out):
    """x_nchw: (B, C, H, W) f32; prepped params from prepare_extractor_params."""
    B = x_nchw.shape[0]
    K, Dp = w_prepped.shape
    tk = _pick_tk(K)

    # Row-major flatten of NCHW == torch.flatten; stream activations in bf16.
    x_flat = x_nchw.reshape(B, K).astype(jnp.bfloat16)

    out_padded = pl.pallas_call(
        _extractor_kernel,
        out_shape=jax.ShapeDtypeStruct((B, Dp), jnp.float32),
        grid_spec=pltpu.PrefetchScalarGridSpec(
            num_scalar_prefetch=0,
            grid=(K // tk,),
            in_specs=[
                pl.BlockSpec((B, tk), lambda k: (0, k)),   # x tile
                pl.BlockSpec((tk, Dp), lambda k: (k, 0)),  # W tile (streamed)
                pl.BlockSpec((1, Dp), lambda k: (0, 0)),   # bias (resident)
            ],
            out_specs=pl.BlockSpec((B, Dp), lambda k: (0, 0)),
            scratch_shapes=[pltpu.VMEM((B, Dp), jnp.float32)],
        ),
        compiler_params=pltpu.CompilerParams(
            dimension_semantics=("arbitrary",),
        ),
    )(x_flat, w_prepped, b_prepped)

    return out_padded[:, :d_out]


if __name__ == "__main__":
    # Small shapes consistent with an image-embedding extractor.
    B, C, H, W_sp = 2, 4, 16, 16
    D = 32
    K = C * H * W_sp

    key = jax.random.PRNGKey(0)
    kx, kw, kb = jax.random.split(key, 3)

    # Deterministic synthetic "image" input in [0, 255] and model parameters.
    x = jax.random.uniform(kx, (B, C, H, W_sp), jnp.float32, 0.0, 255.0)
    w = jax.random.normal(kw, (K, D), jnp.float32) * 0.02
    b = jax.random.normal(kb, (D,), jnp.float32) * 0.01

    # Weight prep happens ONCE (scale fold, bf16 cast, lane padding).
    w_p, b_p = prepare_extractor_params(w, b)
    w_p, b_p = jax.block_until_ready((w_p, b_p))

    out = extractor_forward(x, w_p, b_p, D)
    out = jax.block_until_ready(out)

    # Reference check in plain JAX (same math as the PyTorch module, f32).
    e_ref = (x.reshape(B, K) / 255.0) @ w + b
    ref = e_ref / jnp.linalg.norm(e_ref, axis=1, keepdims=True)
    # bf16-streamed operands with f32 accumulation -> loosen tolerance a bit.
    assert out.shape == (B, D)
    assert jnp.allclose(out, ref, atol=2e-2, rtol=2e-2), "mismatch vs reference"

    print("KERNEL_OK")
</pallas_src>

<mosaic_0001>
module attributes {stable_mosaic.version = 11 : i64} {
  func.func @_extractor_kernel(%arg0: i32, %arg1: memref<2x1024xbf16, #tpu.memory_space<vmem>>, %arg2: memref<1024x128xbf16, #tpu.memory_space<vmem>>, %arg3: memref<1x128xf32, #tpu.memory_space<vmem>>, %arg4: memref<2x128xf32, #tpu.memory_space<vmem>>, %arg5: memref<2x128xf32, #tpu.memory_space<vmem>>) attributes {dimension_semantics = [#tpu.dimension_semantics<arbitrary>], iteration_bounds = array<i64: 1>, scalar_prefetch = 0 : i64, scratch_operands = 1 : i64, tpu.core_type = #tpu.core_type<tc>, window_params = [{transform_indices = @transform_0, window_bounds = array<i64: 2, 1024>}, {transform_indices = @transform_1, window_bounds = array<i64: 1024, 128>}, {pipeline_mode = #tpu.pipeline_mode<synchronous>, transform_indices = @transform_2, window_bounds = array<i64: 1, 128>}, {pipeline_mode = #tpu.pipeline_mode<synchronous>, transform_indices = @transform_3, window_bounds = array<i64: 2, 128>}]} {
    %c0_i32 = arith.constant 0 : i32
    %0 = arith.cmpi eq, %arg0, %c0_i32 : i32
    %1 = arith.extui %0 : i1 to i32
    %c0_i32_0 = arith.constant 0 : i32
    %2 = arith.cmpi ne, %1, %c0_i32_0 : i32
    scf.if %2 {
      %cst_10 = arith.constant 0.000000e+00 : f32
      %12 = vector.broadcast %cst_10 : f32 to vector<2x128xf32>
      %c0_11 = arith.constant 0 : index
      %c0_12 = arith.constant 0 : index
      %13 = vector.load %arg5[%c0_11, %c0_12] : memref<2x128xf32, #tpu.memory_space<vmem>>, vector<2x128xf32>
      tpu.vector_store %arg5[%c0_11, %c0_12], %12 {strides = array<i32>} : memref<2x128xf32, #tpu.memory_space<vmem>>, vector<2x128xf32>,
    } else {
    }
    %c0 = arith.constant 0 : index
    %c0_1 = arith.constant 0 : index
    %3 = vector.load %arg5[%c0, %c0_1] : memref<2x128xf32, #tpu.memory_space<vmem>>, vector<2x128xf32>
    %c0_2 = arith.constant 0 : index
    %c0_3 = arith.constant 0 : index
    %4 = vector.load %arg1[%c0_2, %c0_3] : memref<2x1024xbf16, #tpu.memory_space<vmem>>, vector<2x1024xbf16>
    %c0_4 = arith.constant 0 : index
    %c0_5 = arith.constant 0 : index
    %5 = vector.load %arg2[%c0_4, %c0_5] : memref<1024x128xbf16, #tpu.memory_space<vmem>>, vector<1024x128xbf16>
    %cst = arith.constant dense<0.000000e+00> : vector<2x128xf32>
    %6 = tpu.matmul %4, %5, %cst {dimension_numbers = #tpu.dot_dimension_numbers<[1], [0], [0], [1], [0, 0, 1, 1], [], []>} : vector<2x1024xbf16>, vector<1024x128xbf16>, vector<2x128xf32> -> vector<2x128xf32>
    %7 = arith.addf %3, %6 : vector<2x128xf32>
    %c0_6 = arith.constant 0 : index
    %c0_7 = arith.constant 0 : index
    %8 = vector.load %arg5[%c0_6, %c0_7] : memref<2x128xf32, #tpu.memory_space<vmem>>, vector<2x128xf32>
    tpu.vector_store %arg5[%c0_6, %c0_7], %7 {strides = array<i32>} : memref<2x128xf32, #tpu.memory_space<vmem>>, vector<2x128xf32>,
    %c0_i32_8 = arith.constant 0 : i32
    %9 = arith.cmpi eq, %arg0, %c0_i32_8 : i32
    %10 = arith.extui %9 : i1 to i32
    %c0_i32_9 = arith.constant 0 : i32
    %11 = arith.cmpi ne, %10, %c0_i32_9 : i32
    scf.if %11 {
      %c0_10 = arith.constant 0 : index
      %c0_11 = arith.constant 0 : index
      %12 = vector.load %arg5[%c0_10, %c0_11] : memref<2x128xf32, #tpu.memory_space<vmem>>, vector<2x128xf32>
      %c0_12 = arith.constant 0 : index
      %c0_13 = arith.constant 0 : index
      %13 = vector.load %arg3[%c0_12, %c0_13] : memref<1x128xf32, #tpu.memory_space<vmem>>, vector<1x128xf32>
      %14 = vector.broadcast %13 : vector<1x128xf32> to vector<2x128xf32>
      %15 = arith.addf %12, %14 : vector<2x128xf32>
      %16 = arith.mulf %15, %15 : vector<2x128xf32>
      %cst_14 = arith.constant dense<0.000000e+00> : vector<2xf32>
      %17 = vector.multi_reduction <add>, %16, %cst_14 [1] : vector<2x128xf32> to vector<2xf32>
      %18 = vector.shape_cast %17 : vector<2xf32> to vector<2x1xf32>
      %19 = math.rsqrt %18 : vector<2x1xf32>
      %20 = vector.broadcast %19 : vector<2x1xf32> to vector<2x128xf32>
      %21 = arith.mulf %15, %20 : vector<2x128xf32>
      %c0_15 = arith.constant 0 : index
      %c0_16 = arith.constant 0 : index
      %22 = vector.load %arg4[%c0_15, %c0_16] : memref<2x128xf32, #tpu.memory_space<vmem>>, vector<2x128xf32>
      tpu.vector_store %arg4[%c0_15, %c0_16], %21 {strides = array<i32>} : memref<2x128xf32, #tpu.memory_space<vmem>>, vector<2x128xf32>,
    } else {
    }
    return
  }
  func.func @transform_0(%arg0: i32) -> (i32, i32) {
    %c0_i32 = arith.constant 0 : i32
    %c0_i32_0 = arith.constant 0 : i32
    return %c0_i32, %arg0 : i32, i32
  }
  func.func @transform_1(%arg0: i32) -> (i32, i32) {
    %c0_i32 = arith.constant 0 : i32
    %c0_i32_0 = arith.constant 0 : i32
    return %arg0, %c0_i32 : i32, i32
  }
  func.func @transform_2(%arg0: i32) -> (i32, i32) {
    %c0_i32 = arith.constant 0 : i32
    %c0_i32_0 = arith.constant 0 : i32
    %c0_i32_1 = arith.constant 0 : i32
    return %c0_i32, %c0_i32_0 : i32, i32
  }
  func.func @transform_3(%arg0: i32) -> (i32, i32) {
    %c0_i32 = arith.constant 0 : i32
    %c0_i32_0 = arith.constant 0 : i32
    %c0_i32_1 = arith.constant 0 : i32
    return %c0_i32, %c0_i32_0 : i32, i32
  }
}

</mosaic_0001>

<bundles_post_ra>
// kernel: extractor_forward.1
= control target key start
LH: loop header
LB: loop body
LE: loop exit
PB: predicated region body
PF: predicated region fallthrough
CT: control target
= control target key end

     0   :  { %8 = vsyncpa [#allocation4], 0  ;;  %s1134_s0 = inlined_call_operand.vmem [shape: bf16[2,1024], index: 0, kind: input, shape index: {}]   ;;  %s1135_s1 = inlined_call_operand.hbm [shape: bf16[1024,128], index: 1, kind: input, shape index: {}]   ;;  %s1136_s2 = inlined_call_operand.vmem [shape: f32[1,128], index: 2, kind: input, shape index: {}]   ;;  %s1137_s3 = inlined_call_operand.hbm [shape: f32[2,128], index: 3, kind: output, shape index: {}]  }
   0x1   :  { %9 = vsyncpa [#allocation5], 0  ;;  %s16_s14 = sshll.u32 %s1135_s1, 4  ;;  %s1097_s15 = smov [#allocation3]   ;;  %s17_s14 = int_to_ptr.hbm [resolvable:$true] %s16_s14 }
   0x2   :  { %s18_s16 = sshll.u32 %s1097_s15, 4  ;;  %s1098_s17 = smov 64   ;;  %s19_s16 = int_to_ptr.vmem [resolvable:$true] %s18_s16 }
   0x3   :  { %s1099_s18 = smov 4  }
   0x4   :  { %24 = dma.hbm_to_vmem [thread:$0]  %s17_s14, 8192, %s19_s16, [#allocation4], %s1098_s17, %s1098_s17, %s1099_s18  }
   0x5   :  { %1093 = dma.done.wait [#allocation4], 8192  }
   0x6   :  { %1094 = vsyncadd [#allocation4], 4294959104  ;;  %v980_v0 = vld [vmem:[#allocation3 + $0x38] sm:$0xff]  ;;  %v979_v4 = vld [vmem:[#allocation3 + $0x30] sm:$0xff]  ;;  %vm684_vm0 = vcmask 1041408   ;;  %s1101_s21 = smov [#allocation6]  }
   0x7   :  { %v988_v1 = vld [vmem:[#allocation3 + $0x78] sm:$0xff]  ;;  %568 = vmatpush.bf16.msra.mxu0 %v980_v0  ;;  %v987_v5 = vld [vmem:[#allocation3 + $0x70] sm:$0xff]  ;;  %v978_v8 = vld [vmem:[#allocation3 + $0x28] sm:$0xff]  ;;  %s705_s22 = sshll.u32 %s1101_s21, 4  ;;  %s707_s24 = sshll.u32 %s1137_s3, 4  ;;  %s706_s22 = int_to_ptr.vmem [resolvable:$true] %s705_s22  ;;  %s708_s24 = int_to_ptr.hbm [resolvable:$true] %s707_s24 }
   0x8   :  { %v996_v2 = vld [vmem:[#allocation3 + $0xb8] sm:$0xff]  ;;  %581 = vmatpush.bf16.msra.mxu1 %v988_v1  ;;  %v995_v6 = vld [vmem:[#allocation3 + $0xb0] sm:$0xff]  ;;  %v986_v9 = vld [vmem:[#allocation3 + $0x68] sm:$0xff] }
   0x9   :  { %v1004_v3 = vld [vmem:[#allocation3 + $0xf8] sm:$0xff]  ;;  %594 = vmatpush.bf16.msra.mxu2 %v996_v2  ;;  %v1003_v7 = vld [vmem:[#allocation3 + $0xf0] sm:$0xff]  ;;  %v994_v10 = vld [vmem:[#allocation3 + $0xa8] sm:$0xff] }
   0xa   :  { %607 = vmatpush.bf16.msra.mxu3 %v1004_v3  ;;  %v1002_v11 = vld [vmem:[#allocation3 + $0xe8] sm:$0xff]  ;;  %v977_v12 = vld [vmem:[#allocation3 + $0x20] sm:$0xff]  ;;  %v37_v16 = vld [vmem:[%s1134_s0] sm:$0xff] }
   0xb   :  { %569 = vmatpush.bf16.msra.mxu0 %v979_v4  ;;  %v985_v13 = vld [vmem:[#allocation3 + $0x60] sm:$0xff]  ;;  %v976_v17 = vld [vmem:[#allocation3 + $0x18] sm:$0xff]  ;;  %167 = vst [vmem:[#allocation1] ss:$9 sm:$0xff] %v37_v16  ;;  %v975_v21 = vld [vmem:[#allocation3 + $0x10] sm:$0xff] }
   0xc   :  { %582 = vmatpush.bf16.msra.mxu1 %v987_v5  ;;  %v993_v14 = vld [vmem:[#allocation3 + $0xa0] sm:$0xff]  ;;  %v984_v18 = vld [vmem:[#allocation3 + $0x58] sm:$0xff]  ;;  %v983_v22 = vld [vmem:[#allocation3 + $0x50] sm:$0xff] }
   0xd   :  { %595 = vmatpush.bf16.msra.mxu2 %v995_v6  ;;  %v1001_v15 = vld [vmem:[#allocation3 + $0xe0] sm:$0xff]  ;;  %v992_v19 = vld [vmem:[#allocation3 + $0x98] sm:$0xff]  ;;  %v991_v23 = vld [vmem:[#allocation3 + $0x90] sm:$0xff] }
   0xe   :  { %608 = vmatpush.bf16.msra.mxu3 %v1003_v7  ;;  %v1000_v20 = vld [vmem:[#allocation3 + $0xd8] sm:$0xff]  ;;  %v999_v24 = vld [vmem:[#allocation3 + $0xd0] sm:$0xff]  ;;  %v974_v25 = vld [vmem:[#allocation3 + $0x8] sm:$0xff] }
   0xf   :  { %570 = vmatpush.bf16.msra.mxu0 %v978_v8  ;;  %v982_v26 = vld [vmem:[#allocation3 + $0x48] sm:$0xff]  ;;  %v973_v29 = vld [vmem:[#allocation3] sm:$0xff]  ;;  %v1012_v33 = vld [vmem:[#allocation3 + $0x138] sm:$0xff] }
  0x10   :  { %583 = vmatpush.bf16.msra.mxu1 %v986_v9  ;;  %v990_v27 = vld [vmem:[#allocation3 + $0x88] sm:$0xff]  ;;  %v981_v30 = vld [vmem:[#allocation3 + $0x40] sm:$0xff]  ;;  %v1020_v34 = vld [vmem:[#allocation3 + $0x178] sm:$0xff] }
  0x11   :  { %596 = vmatpush.bf16.msra.mxu2 %v994_v10  ;;  %v998_v28 = vld [vmem:[#allocation3 + $0xc8] sm:$0xff]  ;;  %v989_v31 = vld [vmem:[#allocation3 + $0x80] sm:$0xff]  ;;  %v1028_v35 = vld [vmem:[#allocation3 + $0x1b8] sm:$0xff] }
  0x12   :  { %609 = vmatpush.bf16.msra.mxu3 %v1002_v11  ;;  %v997_v32 = vld [vmem:[#allocation3 + $0xc0] sm:$0xff]  ;;  %v1036_v36 = vld [vmem:[#allocation3 + $0x1f8] sm:$0xff]  ;;  %v1011_v37 = vld [vmem:[#allocation3 + $0x130] sm:$0xff]  ;;  %v1100_v11 = vmov 0.0  }
  0x13   :  { %571 = vmatpush.bf16.msra.mxu0 %v977_v12  ;;  %v170_v38 = vld [vmem:[#allocation1 + $0x12] sm:$0xff]  ;;  %v168_v39 = vld [vmem:[#allocation1] sm:$0xff]  ;;  %v169_v42 = vld [vmem:[#allocation1 + $0x9] sm:$0xff]  ;;  %35 = vst [vmem:[#allocation2] sm:$0x3] %v1100_v11 }
  0x14   :  { %584 = vmatpush.bf16.msra.mxu1 %v985_v13  ;;  %v1019_v40 = vld [vmem:[#allocation3 + $0x170] sm:$0xff]  ;;  %v1010_v45 = vld [vmem:[#allocation3 + $0x128] sm:$0xff]  ;;  %v1009_v49 = vld [vmem:[#allocation3 + $0x120] sm:$0xff] }
  0x15   :  { %597 = vmatpush.bf16.msra.mxu2 %v993_v14  ;;  %v171_v41 = vld [vmem:[#allocation1 + $0x1b] sm:$0xff]  ;;  %v1018_v46 = vld [vmem:[#allocation3 + $0x168] sm:$0xff]  ;;  %v1017_v50 = vld [vmem:[#allocation3 + $0x160] sm:$0xff] }
  0x16   :  { %610 = vmatpush.bf16.msra.mxu3 %v1001_v15  ;;  %v1027_v43 = vld [vmem:[#allocation3 + $0x1b0] sm:$0xff]  ;;  %v1026_v47 = vld [vmem:[#allocation3 + $0x1a8] sm:$0xff]  ;;  %v1025_v51 = vld [vmem:[#allocation3 + $0x1a0] sm:$0xff] }
  0x17   :  { %572 = vmatpush.bf16.msra.mxu0 %v976_v17  ;;  %v1035_v44 = vld [vmem:[#allocation3 + $0x1f0] sm:$0xff]  ;;  %v1034_v48 = vld [vmem:[#allocation3 + $0x1e8] sm:$0xff]  ;;  %v1033_v52 = vld [vmem:[#allocation3 + $0x1e0] sm:$0xff] }
  0x18   :  { %585 = vmatpush.bf16.msra.mxu1 %v984_v18  ;;  %v1008_v53 = vld [vmem:[#allocation3 + $0x118] sm:$0xff]  ;;  %v1007_v57 = vld [vmem:[#allocation3 + $0x110] sm:$0xff]  ;;  %v1006_v61 = vld [vmem:[#allocation3 + $0x108] sm:$0xff] }
  0x19   :  { %598 = vmatpush.bf16.msra.mxu2 %v992_v19  ;;  %v1016_v54 = vld [vmem:[#allocation3 + $0x158] sm:$0xff]  ;;  %v1015_v58 = vld [vmem:[#allocation3 + $0x150] sm:$0xff]  ;;  %v1014_v62 = vld [vmem:[#allocation3 + $0x148] sm:$0xff] }
  0x1a   :  { %611 = vmatpush.bf16.msra.mxu3 %v1000_v20  ;;  %v1024_v55 = vld [vmem:[#allocation3 + $0x198] sm:$0xff]  ;;  %v1023_v59 = vld [vmem:[#allocation3 + $0x190] sm:$0xff]  ;;  %v1022_v63 = vld [vmem:[#allocation3 + $0x188] sm:$0xff] }
  0x1b   :  { %573 = vmatpush.bf16.msra.mxu0 %v975_v21  ;;  %v1032_v56 = vld [vmem:[#allocation3 + $0x1d8] sm:$0xff]  ;;  %v1031_v60 = vld [vmem:[#allocation3 + $0x1d0] sm:$0xff]  ;;  %v1030_v0 = vld [vmem:[#allocation3 + $0x1c8] sm:$0xff] }
  0x1c   :  { %586 = vmatpush.bf16.msra.mxu1 %v983_v22  ;;  %v1005_v1 = vld [vmem:[#allocation3 + $0x100] sm:$0xff]  ;;  %v174_v7 = vld [vmem:[#allocation1 + $0x36] sm:$0xff]  ;;  %v175_v8 = vld [vmem:[#allocation1 + $0x3f] sm:$0xff] }
  0x1d   :  { %599 = vmatpush.bf16.msra.mxu2 %v991_v23  ;;  %v1013_v2 = vld [vmem:[#allocation3 + $0x140] sm:$0xff] }
  0x1e   :  { %612 = vmatpush.bf16.msra.mxu3 %v999_v24  ;;  %v1021_v3 = vld [vmem:[#allocation3 + $0x180] sm:$0xff] }
  0x1f   :  { %574 = vmatpush.bf16.msra.mxu0 %v974_v25  ;;  %v1029_v4 = vld [vmem:[#allocation3 + $0x1c0] sm:$0xff] }
  0x20   :  { %587 = vmatpush.bf16.msra.mxu1 %v982_v26  ;;  %v172_v5 = vld [vmem:[#allocation1 + $0x24] sm:$0xff]  ;;  %v173_v6 = vld [vmem:[#allocation1 + $0x2d] sm:$0xff] }
  0x21   :  { %600 = vmatpush.bf16.msra.mxu2 %v990_v27 }
  0x22   :  { %613 = vmatpush.bf16.msra.mxu3 %v998_v28 }
  0x23   :  { %575 = vmatpush.bf16.msra.mxu0 %v973_v29 }
  0x24   :  { %588 = vmatpush.bf16.msra.mxu1 %v981_v30  ;;  %v36_v30 = vld [vmem:[#allocation2] sm:$0x3] }
  0x25   :  { %601 = vmatpush.bf16.msra.mxu2 %v989_v31 }
  0x26   :  { %614 = vmatpush.bf16.msra.mxu3 %v997_v32  ;;  %576 = vmatmul.bf16.vlgmr.msra.gmra.mxu0 %v168_v39 }
  0x27   :  { %620 = vmatpush.bf16.msrb.mxu0 %v1012_v33  ;;  %589 = vmatmul.bf16.vlgmr.msra.gmra.mxu1 %v169_v42 }
  0x28   :  { %633 = vmatpush.bf16.msrb.mxu1 %v1020_v34  ;;  %602 = vmatmul.bf16.vlgmr.msra.gmra.mxu2 %v170_v38 }
  0x29   :  { %646 = vmatpush.bf16.msrb.mxu2 %v1028_v35  ;;  %615 = vmatmul.bf16.vlgmr.msra.gmra.mxu3 %v171_v41  ;;  %v1042_v35 = vld [vmem:[%s1136_s2] ss:$0 sm:$0xff] }
  0x2a   :  { %659 = vmatpush.bf16.msrb.mxu3 %v1036_v36 }
  0x2b   :  { %621 = vmatpush.bf16.msrb.mxu0 %v1011_v37 }
  0x2c   :  { %634 = vmatpush.bf16.msrb.mxu1 %v1019_v40 }
  0x2d   :  { %647 = vmatpush.bf16.msrb.mxu2 %v1027_v43 }
  0x2e   :  { %660 = vmatpush.bf16.msrb.mxu3 %v1035_v44 }
  0x2f   :  { %622 = vmatpush.bf16.msrb.mxu0 %v1010_v45 }
  0x30   :  { %635 = vmatpush.bf16.msrb.mxu1 %v1018_v46 }
  0x31   :  { %648 = vmatpush.bf16.msrb.mxu2 %v1026_v47 }
  0x32   :  { %661 = vmatpush.bf16.msrb.mxu3 %v1034_v48 }
  0x33   :  { %623 = vmatpush.bf16.msrb.mxu0 %v1009_v49 }
  0x34   :  { %636 = vmatpush.bf16.msrb.mxu1 %v1017_v50 }
  0x35   :  { %649 = vmatpush.bf16.msrb.mxu2 %v1025_v51 }
  0x36   :  { %662 = vmatpush.bf16.msrb.mxu3 %v1033_v52 }
  0x37   :  { %624 = vmatpush.bf16.msrb.mxu0 %v1008_v53 }
  0x38   :  { %637 = vmatpush.bf16.msrb.mxu1 %v1016_v54 }
  0x39   :  { %650 = vmatpush.bf16.msrb.mxu2 %v1024_v55 }
  0x3a   :  { %663 = vmatpush.bf16.msrb.mxu3 %v1032_v56 }
  0x3b   :  { %625 = vmatpush.bf16.msrb.mxu0 %v1007_v57 }
  0x3c   :  { %638 = vmatpush.bf16.msrb.mxu1 %v1015_v58 }
  0x3d   :  { %651 = vmatpush.bf16.msrb.mxu2 %v1023_v59 }
  0x3e   :  { %664 = vmatpush.bf16.msrb.mxu3 %v1031_v60 }
  0x3f   :  { %626 = vmatpush.bf16.msrb.mxu0 %v1006_v61 }
  0x40   :  { %639 = vmatpush.bf16.msrb.mxu1 %v1014_v62 }
  0x41   :  { %652 = vmatpush.bf16.msrb.mxu2 %v1022_v63 }
  0x42   :  { %665 = vmatpush.bf16.msrb.mxu3 %v1030_v0 }
  0x43   :  { %627 = vmatpush.bf16.msrb.mxu0 %v1005_v1 }
  0x44   :  { %640 = vmatpush.bf16.msrb.mxu1 %v1013_v2 }
  0x45   :  { %653 = vmatpush.bf16.msrb.mxu2 %v1021_v3 }
  0x46   :  { %666 = vmatpush.bf16.msrb.mxu3 %v1029_v4  ;;  %628 = vmatmul.bf16.vlgmr.msrb.gmra.mxu0 %v172_v5 }
  0x47   :  { %641 = vmatmul.bf16.vlgmr.msrb.gmra.mxu1 %v173_v6 }
  0x48   :  { %654 = vmatmul.bf16.vlgmr.msrb.gmra.mxu2 %v174_v7 }
  0x49   :  { %667 = vmatmul.bf16.vlgmr.msrb.gmra.mxu3 %v175_v8 }
  0xa3   :  { %v577_v9 = vpop.f32.mrf.mxu0 }
  0xa4   :  { %v590_v10 = vpop.f32.mrf.mxu1 }
  0xa5   :  { %v591_v18 = vadd.f32 %v590_v10, %v577_v9 }
  0xab   :  { %v603_v12 = vpop.f32.mrf.mxu2  ;;  %v579_v14 = vpop.f32.mrf.mxu0 }
  0xac   :  { %v616_v13 = vpop.f32.mrf.mxu3  ;;  %v592_v15 = vpop.f32.mrf.mxu1  ;;  %v604_v19 = vadd.f32 %v603_v12, %v591_v18 }
  0xae   :  { %v617_v20 = vadd.f32 %v616_v13, %v604_v19 }
  0xb3   :  { %v605_v16 = vpop.f32.mrf.mxu2 }
  0xb4   :  { %v618_v17 = vpop.f32.mrf.mxu3 }
  0xc3   :  { %v629_v21 = vpop.f32.mrf.mxu0 }
  0xc4   :  { %v642_v22 = vpop.f32.mrf.mxu1  ;;  %v630_v23 = vadd.f32 %v629_v21, %v617_v20 }
  0xc6   :  { %v643_v24 = vadd.f32 %v642_v22, %v630_v23 }
  0xcb   :  { %v655_v25 = vpop.f32.mrf.mxu2  ;;  %v631_v28 = vpop.f32.mrf.mxu0 }
  0xcc   :  { %v668_v26 = vpop.f32.mrf.mxu3  ;;  %v656_v27 = vadd.f32 %v655_v25, %v643_v24  ;;  %v644_v29 = vpop.f32.mrf.mxu1 }
  0xce   :  { %v669_v31 = vadd.f32 %v668_v26, %v656_v27 }
  0xd0   :  { %v672_v32 = vadd.f32 %v669_v31, %v36_v30 }
  0xd2   :  { %673 = vst [vmem:[#allocation2] sm:$0x3] %v672_v32 }
  0xd3   :  { %v657_v33 = vpop.f32.mrf.mxu2 }
  0xd4   :  { %v670_v34 = vpop.f32.mrf.mxu3 }
  0xd9   :  { %v677_v36 = vld [vmem:[#allocation2] sm:$0x3] }
  0xda   :  { %v682_v37 = vadd.f32 %v1042_v35, %v677_v36 }
  0xdc   :  { %v683_v38 = vmul.f32 %v682_v37, %v682_v37 }
  0xde   :  { %v685_v39 = vsel %vm684_vm0, %v683_v38, 0.0 }
  0xdf   :  { %686 = vadd.xlane.f32.xlu0 %v685_v39 }
 0x152   :  { %v687_v40 = vpop.xlane.xlu0 %686 }
 0x153   :  { %1043 = vrsqrt.f32 %v687_v40  ;;  %vm694_vm2 = vweird.f32 %v687_v40 }
 0x159   :  { %v1044_v41 = vpop.eup %1043 }
 0x15a   :  { %v689_v42 = vmul.f32 %v1044_v41, %v687_v40  ;;  %vm695_vm1 = vweird.f32 %v1044_v41 }
 0x15b   :  { %vm696_vm3 = vmor %vm694_vm2, %vm695_vm1 }
 0x15c   :  { %v690_v43 = vmul.f32 %v1044_v41, %v689_v42 }
 0x15e   :  { %v691_v44 = vmul.f32 0.5, %v690_v43 }
 0x160   :  { %v692_v45 = vsub.f32 1.5, %v691_v44 }
 0x162   :  { %v693_v46 = vmul.f32 %v1044_v41, %v692_v45 }
 0x164   :  { %v697_v47 = vsel %vm696_vm3, %v1044_v41, %v693_v46 }
 0x165   :  { %v698_v48 = vmul.f32 %v697_v47, %v682_v37 }
 0x167   :  { %699 = vst [vmem:[#allocation6] sm:$0x3] %v698_v48 }
 0x168   :  { %710 = dma.vmem_to_hbm [thread:$0]  %s706_s22, 32, %s708_s24, [#allocation5]  }
 0x169   :  { %1095 = dma.done.wait [#allocation5], 32  }
 0x16a   :  { %1096 = vsyncadd [#allocation5], 4294967264 }
 0x16b   :  { %715 = vsyncpa [#allocation4], 1 }
 0x16c   :  { %716 = vsyncpa [#allocation5], 1 }

</bundles_post_ra>
